<compile_context>
chip_gen: v7x
topology: tpu7x:2x2x1
jax: 0.10.0
libtpu: 0.0.40
codegen_flags: <defaults>
</compile_context>

<pallas_src>
import functools

import jax
import jax.numpy as jnp
from jax import lax
from jax.experimental import pallas as pl
from jax.experimental.pallas import tpu as pltpu


# ---------------------------------------------------------------------------
# Large-N path (N % 128 == 0): touch only the row / column strips holding i.
# ---------------------------------------------------------------------------
def _dense_edge_large(adj, nn, B, N, row_tile):
    dt = adj.dtype
    itemsize = jnp.dtype(dt).itemsize
    TR = min(int(row_tile), N)
    assert TR % 8 == 0, "row_tile must be a multiple of 8"
    NRT = pl.cdiv(N, TR)

    # ---- pass 1: column i, rows 0..i  (128-lane strip, clamped row tiles) --
    def col_kernel(nn_ref, x_ref, o_ref):
        b = pl.program_id(0)
        rt = pl.program_id(1)
        i = nn_ref[b]
        rb = jnp.minimum(rt, i // TR)                 # clamped row-tile index
        rows = rb * TR + lax.broadcasted_iota(jnp.int32, (TR, 1), 0)
        cols = (i // 128) * 128 + lax.broadcasted_iota(jnp.int32, (1, 128), 1)
        mask = (cols == i) & (rows <= i)
        x = x_ref[0]
        o_ref[0] = jnp.where(mask, jnp.ones_like(x), x)

    col_spec = pl.BlockSpec(
        (1, TR, 128),
        lambda b, rt, nn_s: (b, jnp.minimum(rt, nn_s[b] // TR), nn_s[b] // 128),
    )

    adj = pl.pallas_call(
        col_kernel,
        out_shape=jax.ShapeDtypeStruct(adj.shape, dt),
        grid_spec=pltpu.PrefetchScalarGridSpec(
            num_scalar_prefetch=1,
            grid=(B, NRT),
            in_specs=[col_spec],
            out_specs=col_spec,
        ),
        input_output_aliases={1: 0},          # adj (input 1) aliases output 0
        compiler_params=pltpu.CompilerParams(
            dimension_semantics=("parallel", "arbitrary")),
        cost_estimate=pl.CostEstimate(
            flops=2 * B * N * 128, transcendentals=0,
            bytes_accessed=2 * B * N * 128 * itemsize),
    )(nn, adj)

    # ---- pass 2: row i, cols 0..i  (8-sublane strip, full width) -----------
    def row_kernel(nn_ref, x_ref, o_ref):
        b = pl.program_id(0)
        i = nn_ref[b]
        rows = (i // 8) * 8 + lax.broadcasted_iota(jnp.int32, (8, 1), 0)
        cols = lax.broadcasted_iota(jnp.int32, (1, N), 1)
        mask = (rows == i) & (cols <= i)
        x = x_ref[0]
        o_ref[0] = jnp.where(mask, jnp.ones_like(x), x)

    row_spec = pl.BlockSpec((1, 8, N), lambda b, nn_s: (b, nn_s[b] // 8, 0))

    adj = pl.pallas_call(
        row_kernel,
        out_shape=jax.ShapeDtypeStruct(adj.shape, dt),
        grid_spec=pltpu.PrefetchScalarGridSpec(
            num_scalar_prefetch=1,
            grid=(B,),
            in_specs=[row_spec],
            out_specs=row_spec,
        ),
        input_output_aliases={1: 0},
        compiler_params=pltpu.CompilerParams(
            dimension_semantics=("parallel",)),
        cost_estimate=pl.CostEstimate(
            flops=2 * B * 8 * N, transcendentals=0,
            bytes_accessed=2 * B * 8 * N * itemsize),
    )(nn, adj)
    return adj


# ---------------------------------------------------------------------------
# Small / unaligned-N fallback: batch-fused (TB, N, N) blocks, aliased.
# ---------------------------------------------------------------------------
def _dense_edge_small(adj, nn, B, N):
    dt = adj.dtype
    itemsize = jnp.dtype(dt).itemsize
    nn3 = nn.reshape(B, 1, 1)

    def kernel(nn_ref, x_ref, o_ref):
        i = nn_ref[...]                                        # (TB, 1, 1)
        row = lax.broadcasted_iota(jnp.int32, (1, N, N), 1)
        col = lax.broadcasted_iota(jnp.int32, (1, N, N), 2)
        mask = ((row == i) & (col <= i)) | ((col == i) & (row <= i))
        x = x_ref[...]
        o_ref[...] = jnp.where(mask, jnp.ones_like(x), x)

    # Fuse as many batches per grid step as comfortably fit in scoped VMEM
    # (in + out, double-buffered => ~4 live copies of the block).
    budget = 8 * 1024 * 1024
    tb = min(B, max(1, budget // (N * N * itemsize * 4)))
    grid = (pl.cdiv(B, tb),)

    return pl.pallas_call(
        kernel,
        out_shape=jax.ShapeDtypeStruct((B, N, N), dt),
        grid=grid,
        in_specs=[pl.BlockSpec((tb, 1, 1), lambda g: (g, 0, 0)),
                  pl.BlockSpec((tb, N, N), lambda g: (g, 0, 0))],
        out_specs=pl.BlockSpec((tb, N, N), lambda g: (g, 0, 0)),
        input_output_aliases={1: 0},          # adj (input 1) aliases output 0
        compiler_params=pltpu.CompilerParams(
            dimension_semantics=("parallel",)),
        cost_estimate=pl.CostEstimate(
            flops=6 * B * N * N, transcendentals=0,
            bytes_accessed=2 * B * N * N * itemsize),
    )(nn3, adj)


# ---------------------------------------------------------------------------
# Public wrapper (functional: returns the new adjacency; edge_weights as-is).
# ---------------------------------------------------------------------------
@functools.partial(jax.jit, static_argnums=(4,), static_argnames=("row_tile",))
def dense_edge(nodes, adj_mats, edge_weights, num_nodes, B, *, row_tile=512):
    del nodes  # not used by DenseEdge (matches the PyTorch module)
    assert adj_mats.shape[0] == B
    N = adj_mats.shape[-1]
    nn = num_nodes.astype(jnp.int32)
    if N % 128 == 0 and N >= 128:
        new_adj = _dense_edge_large(adj_mats, nn, B, N, row_tile)
    else:
        new_adj = _dense_edge_small(adj_mats, nn, B, N)
    return new_adj, edge_weights


if __name__ == "__main__":
    key = jax.random.PRNGKey(0)

    def reference(adj, num_nodes, B):
        ref = adj
        for b in range(B):
            i = int(num_nodes[b])
            ref = ref.at[b, i, : i + 1].set(1.0)
            ref = ref.at[b, : i + 1, i].set(1.0)
        return ref

    # --- small-N case (typical tiny graph memory) ---------------------------
    B, N, H = 2, 16, 32
    k1, k2, k3 = jax.random.split(key, 3)
    nodes = jax.random.normal(k1, (B, N, H), dtype=jnp.float32)
    adj_mats = jax.random.normal(k2, (B, N, N), dtype=jnp.float32)
    edge_weights = jax.random.normal(k3, (B, N, N), dtype=jnp.float32)
    num_nodes = jnp.array([3, 7], dtype=jnp.int32)

    new_adj, new_ew = dense_edge(nodes, adj_mats, edge_weights, num_nodes, B)
    jax.block_until_ready((new_adj, new_ew))
    assert jnp.array_equal(new_adj, reference(adj_mats, num_nodes, B)), \
        "small-N mismatch vs reference"
    assert jnp.array_equal(new_ew, edge_weights)

    # --- lane-aligned path (exercises the aliased strip kernels + clamping) -
    B2, N2 = 2, 256
    k4, k5 = jax.random.split(k3)
    nodes2 = jnp.zeros((B2, N2, 4), dtype=jnp.float32)
    adj2 = jax.random.normal(k4, (B2, N2, N2), dtype=jnp.float32)
    ew2 = jnp.zeros((B2, N2, N2), dtype=jnp.float32)
    nn2 = jnp.array([7, 135], dtype=jnp.int32)

    new_adj2, _ = dense_edge(nodes2, adj2, ew2, nn2, B2, row_tile=128)
    jax.block_until_ready(new_adj2)
    assert jnp.array_equal(new_adj2, reference(adj2, nn2, B2)), \
        "large-N mismatch vs reference"

    print("KERNEL_OK")
</pallas_src>

<mosaic_0001>
module attributes {stable_mosaic.version = 11 : i64} {
  func.func @kernel(%arg0: i32, %arg1: memref<2x1x1xi32, #tpu.memory_space<vmem>>, %arg2: memref<2x16x16xf32, #tpu.memory_space<vmem>>, %arg3: memref<2x16x16xf32, #tpu.memory_space<vmem>>) attributes {dimension_semantics = [#tpu.dimension_semantics<parallel>], iteration_bounds = array<i64: 1>, scalar_prefetch = 0 : i64, scratch_operands = 0 : i64, tpu.core_type = #tpu.core_type<tc>, window_params = [{transform_indices = @transform_0, window_bounds = array<i64: 2, 1, 1>}, {transform_indices = @transform_1, window_bounds = array<i64: 2, 16, 16>}, {transform_indices = @transform_2, window_bounds = array<i64: 2, 16, 16>}]} {
    %c0 = arith.constant 0 : index
    %c0_0 = arith.constant 0 : index
    %c0_1 = arith.constant 0 : index
    %0 = vector.load %arg1[%c0, %c0_0, %c0_1] : memref<2x1x1xi32, #tpu.memory_space<vmem>>, vector<2x1x1xi32>
    %1 = tpu.iota {dimensions = array<i32: 1>} : vector<1x16x16xi32>
    %2 = tpu.iota {dimensions = array<i32: 2>} : vector<1x16x16xi32>
    %3 = vector.broadcast %1 : vector<1x16x16xi32> to vector<2x16x16xi32>
    %4 = vector.broadcast %0 : vector<2x1x1xi32> to vector<2x16x16xi32>
    %5 = arith.cmpi eq, %3, %4 : vector<2x16x16xi32>
    %6 = vector.broadcast %2 : vector<1x16x16xi32> to vector<2x16x16xi32>
    %7 = vector.broadcast %0 : vector<2x1x1xi32> to vector<2x16x16xi32>
    %8 = arith.cmpi sle, %6, %7 : vector<2x16x16xi32>
    %9 = arith.andi %5, %8 : vector<2x16x16xi1>
    %10 = vector.broadcast %2 : vector<1x16x16xi32> to vector<2x16x16xi32>
    %11 = vector.broadcast %0 : vector<2x1x1xi32> to vector<2x16x16xi32>
    %12 = arith.cmpi eq, %10, %11 : vector<2x16x16xi32>
    %13 = vector.broadcast %1 : vector<1x16x16xi32> to vector<2x16x16xi32>
    %14 = vector.broadcast %0 : vector<2x1x1xi32> to vector<2x16x16xi32>
    %15 = arith.cmpi sle, %13, %14 : vector<2x16x16xi32>
    %16 = arith.andi %12, %15 : vector<2x16x16xi1>
    %17 = arith.ori %9, %16 : vector<2x16x16xi1>
    %c0_2 = arith.constant 0 : index
    %c0_3 = arith.constant 0 : index
    %c0_4 = arith.constant 0 : index
    %18 = vector.load %arg2[%c0_2, %c0_3, %c0_4] : memref<2x16x16xf32, #tpu.memory_space<vmem>>, vector<2x16x16xf32>
    %cst = arith.constant 1.000000e+00 : f32
    %19 = vector.broadcast %cst : f32 to vector<2x16x16xf32>
    %20 = arith.select %17, %19, %18 : vector<2x16x16xi1>, vector<2x16x16xf32>
    %c0_5 = arith.constant 0 : index
    %c0_6 = arith.constant 0 : index
    %c0_7 = arith.constant 0 : index
    %21 = vector.load %arg3[%c0_5, %c0_6, %c0_7] : memref<2x16x16xf32, #tpu.memory_space<vmem>>, vector<2x16x16xf32>
    tpu.vector_store %arg3[%c0_5, %c0_6, %c0_7], %20 {strides = array<i32>} : memref<2x16x16xf32, #tpu.memory_space<vmem>>, vector<2x16x16xf32>,
    return
  }
  func.func @transform_0(%arg0: i32) -> (i32, i32, i32) {
    %c0_i32 = arith.constant 0 : i32
    %c0_i32_0 = arith.constant 0 : i32
    %c0_i32_1 = arith.constant 0 : i32
    return %arg0, %c0_i32, %c0_i32_0 : i32, i32, i32
  }
  func.func @transform_1(%arg0: i32) -> (i32, i32, i32) {
    %c0_i32 = arith.constant 0 : i32
    %c0_i32_0 = arith.constant 0 : i32
    %c0_i32_1 = arith.constant 0 : i32
    return %arg0, %c0_i32, %c0_i32_0 : i32, i32, i32
  }
  func.func @transform_2(%arg0: i32) -> (i32, i32, i32) {
    %c0_i32 = arith.constant 0 : i32
    %c0_i32_0 = arith.constant 0 : i32
    %c0_i32_1 = arith.constant 0 : i32
    return %arg0, %c0_i32, %c0_i32_0 : i32, i32, i32
  }
}

</mosaic_0001>

<bundles_post_ra>
// kernel: dense_edge.1
= control target key start
LH: loop header
LB: loop body
LE: loop exit
PB: predicated region body
PF: predicated region fallthrough
CT: control target
= control target key end

     0   :  { %v77_v0 = vmov 0   ;;  %v13_v3 = vlaneseq  ;;  %vm64_vm9 = vcmask 130048   ;;  %s139_s0 = inlined_call_operand.vmem [shape: s32[2,1,1], index: 0, kind: input, shape index: {}]   ;;  %s140_s1 = inlined_call_operand.vmem [shape: f32[2,16,16], index: 1, kind: input, shape index: {}, may-alias: {1,2}]   ;;  %s141_s2 = inlined_call_operand.vmem [shape: f32[2,16,16], index: 2, kind: output, shape index: {}, may-alias: {1,2}]  }
   0x1   :  { %76 = vset.pattern.permute.xlu0 %v77_v0  ;;  %v73_v1 = vld [vmem:[%s139_s0] ss:$0 sm:$0xff]  ;;  %v74_v2 = vld [vmem:[%s139_s0 + $0x1] ss:$0 sm:$0xff]  ;;  %v57_v12 = vld [vmem:[%s140_s1 + $0x8] sm:$0xff] }
   0x2   :  { %27 = vperm.xlu0 %76, %v73_v1   ;;  %v14_v4 = vshrl.u32 %v13_v3, 7  ;;  %v17_v6 = vand.u32 127, %v13_v3  ;;  %v56_v10 = vld [vmem:[%s140_s1] sm:$0xff] }
   0x4   :  { %v15_v5 = vadd.s32 8, %v14_v4 }
   0x6   :  { %30 = vperm.xlu0 %76, %v74_v2  }
  0x81   :  { %v28_v7 = vpop.permute.xlu0 %27 }
  0x82   :  { %vm32_vm0 = vcmp.eq.s32.totalorder %v14_v4, %v28_v7  ;;  %vm33_vm1 = vcmp.eq.s32.totalorder %v15_v5, %v28_v7  ;;  %vm36_vm2 = vcmp.le.s32.totalorder %v17_v6, %v28_v7  ;;  %vm42_vm3 = vcmp.eq.s32.totalorder %v17_v6, %v28_v7 }
  0x83   :  { %vm99_vm4 = vmand %vm32_vm0, %vm36_vm2  ;;  %vm44_vm5 = vcmp.le.s32.totalorder %v14_v4, %v28_v7  ;;  %vm45_vm6 = vcmp.le.s32.totalorder %v15_v5, %v28_v7 }
  0x84   :  { %vm103_vm7 = vmand %vm33_vm1, %vm36_vm2 }
  0x85   :  { %vm48_vm8 = vmand %vm42_vm3, %vm44_vm5  ;;  %v31_v11 = vpop.permute.xlu0 %30 }
  0x86   :  { %vm49_vm10 = vmand %vm42_vm3, %vm45_vm6  ;;  %vm34_vm11 = vcmp.eq.s32.totalorder %v14_v4, %v31_v11  ;;  %vm37_vm12 = vcmp.le.s32.totalorder %v17_v6, %v31_v11  ;;  %vm35_vm14 = vcmp.eq.s32.totalorder %v15_v5, %v31_v11  ;;  %vm43_vm0 = vcmp.eq.s32.totalorder %v17_v6, %v31_v11 }
  0x87   :  { %vm52_vm13 = vmor %vm99_vm4, %vm48_vm8  ;;  %vm46_vm1 = vcmp.le.s32.totalorder %v14_v4, %v31_v11  ;;  %vm47_vm3 = vcmp.le.s32.totalorder %v15_v5, %v31_v11 }
  0x88   :  { %vm53_vm15 = vmor %vm103_vm7, %vm49_vm10  ;;  %v60_v13 = vsel %vm52_vm13, 1.0, %v56_v10 }
  0x89   :  { %v61_v14 = vsel %vm53_vm15, 1.0, %v57_v12  ;;  %65 = vst.msk [vmem:[%s141_s2] sm:$0xff] %vm64_vm9, %v60_v13  ;;  %vm40_vm2 = vmand %vm34_vm11, %vm37_vm12 }
  0x8a   :  { %66 = vst.msk [vmem:[%s141_s2 + $0x8] sm:$0xff] %vm64_vm9, %v61_v14  ;;  %vm41_vm4 = vmand %vm35_vm14, %vm37_vm12 }
  0x8b   :  { %vm50_vm5 = vmand %vm43_vm0, %vm46_vm1 }
  0x8c   :  { %vm51_vm6 = vmand %vm43_vm0, %vm47_vm3 }
  0x8d   :  { %vm54_vm7 = vmor %vm40_vm2, %vm50_vm5 }
  0x8e   :  { %vm55_vm8 = vmor %vm41_vm4, %vm51_vm6 }
  0x91   :  { %v58_v15 = vld [vmem:[%s140_s1 + $0x10] sm:$0xff]  ;;  %v59_v16 = vld [vmem:[%s140_s1 + $0x18] sm:$0xff] }
  0x92   :  { %v62_v17 = vsel %vm54_vm7, 1.0, %v58_v15  ;;  %v63_v18 = vsel %vm55_vm8, 1.0, %v59_v16 }
  0x93   :  { %67 = vst.msk [vmem:[%s141_s2 + $0x10] sm:$0xff] %vm64_vm9, %v62_v17  ;;  %68 = vst.msk [vmem:[%s141_s2 + $0x18] sm:$0xff] %vm64_vm9, %v63_v18 }

</bundles_post_ra>
